<compile_context>
chip_gen: v7x
topology: tpu7x:2x2x1
jax: 0.10.0
libtpu: 0.0.40
codegen_flags: <defaults>
</compile_context>

<pallas_src>
import functools

import jax
import jax.numpy as jnp
from jax.experimental import pallas as pl
from jax.experimental.pallas import tpu as pltpu


def mlp_kernel(params_ref, x_ref, o_ref):
    # params_ref: (18,) f32 in SMEM
    #   [ W1_00, W1_01, W1_10, W1_11, b1_0, b1_1,
    #     W2_00, W2_01, W2_10, W2_11, b2_0, b2_1,
    #     W3_00, W3_01, W3_10, W3_11, b3_0, b3_1 ]   (torch W[out, in] order)
    # x_ref / o_ref: (rows, 128) f32 in VMEM; lanes hold interleaved features:
    #   even lane -> feature 0, odd lane -> feature 1 of the same batch element.
    p = params_ref
    rows, lanes = x_ref.shape

    # Lane-parity mask, (1, lanes); broadcasts over sublanes in every op below.
    lane = jax.lax.broadcasted_iota(jnp.int32, (1, lanes), 1)
    is_f0 = (lane % 2) == 0

    def linear2x2(v, w00, w01, w10, w11, b0, b1):
        # "partner" = the other feature of the same batch element, i.e. an
        # adjacent even<->odd lane swap: even lane wants lane+1, odd lane wants
        # lane-1.  Built from two lane rotations (XLU) + a parity select.
        right = pltpu.roll(v, shift=lanes - 1, axis=1)   # brings v[i+1] to lane i
        left = pltpu.roll(v, shift=1, axis=1)            # brings v[i-1] to lane i
        partner = jnp.where(is_f0, right, left)
        c_self = jnp.where(is_f0, w00, w11)              # (1, lanes)
        c_part = jnp.where(is_f0, w01, w10)
        bias = jnp.where(is_f0, b0, b1)
        return c_self * v + c_part * partner + bias

    x = x_ref[...]
    h = jnp.maximum(linear2x2(x, p[0], p[1], p[2], p[3], p[4], p[5]), 0.0)
    g = jnp.maximum(linear2x2(h, p[6], p[7], p[8], p[9], p[10], p[11]), 0.0)
    o_ref[...] = linear2x2(g, p[12], p[13], p[14], p[15], p[16], p[17])


def _pack_params(params):
    """Flatten all weights/biases (torch W[out, in] convention) into one (18,) f32."""
    flat = []
    for name in ("linear1", "linear2", "linear3"):
        W, b = params[name]
        flat.append(jnp.asarray(W, jnp.float32).reshape(-1))   # W00, W01, W10, W11
        flat.append(jnp.asarray(b, jnp.float32).reshape(-1))   # b0, b1
    return jnp.concatenate(flat)


def _choose_rows_per_tile(R):
    """Sublane tile size: ~2 MiB payload/step; even tile count for v7x megacore."""
    max_rows = 4096                      # 4096 rows x 128 lanes x 4 B = 2 MiB / tile
    if R > max_rows:
        return max_rows                  # multiple of 8 -> legal block shape
    if R >= 16 and R % 16 == 0:
        return R // 2                    # 2 balanced tiles -> both v7x TCs busy
    return R                             # single full-array block (always legal)


@functools.partial(jax.jit, static_argnames=("rows_per_tile",))
def example_net_forward(x, params, *, rows_per_tile=None):
    """x: (B, 2) float32; params: dict of (W (2,2), b (2,)) per layer.

    Returns (B, 2) float32, matching torch: relu(L1) -> relu(L2) -> L3.
    """
    B = x.shape[0]
    p_flat = _pack_params(params)                       # (18,) f32 -> SMEM

    # Free row-major view: (B, 2) -> (B*2,) -> (R, 128), features lane-interleaved.
    flat = x.astype(jnp.float32).reshape(-1)
    n = flat.shape[0]
    R = pl.cdiv(n, 128)
    padded = (R * 128) != n
    if padded:
        # Only when B % 64 != 0; costs one extra (small) copy of x.
        flat = jnp.pad(flat, (0, R * 128 - n))
    xi = flat.reshape(R, 128)

    if rows_per_tile is None:
        rows_per_tile = _choose_rows_per_tile(R)
    rows_per_tile = min(rows_per_tile, R)
    grid = (pl.cdiv(R, rows_per_tile),)

    out = pl.pallas_call(
        mlp_kernel,
        out_shape=jax.ShapeDtypeStruct((R, 128), jnp.float32),
        grid=grid,
        in_specs=[
            # single consolidated parameter block, resident in SMEM
            pl.BlockSpec(memory_space=pltpu.MemorySpace.SMEM),
            # sublane-dense batch tiles, double-buffered by the Pallas pipeline
            pl.BlockSpec((rows_per_tile, 128), lambda i: (i, 0)),
        ],
        out_specs=pl.BlockSpec((rows_per_tile, 128), lambda i: (i, 0)),
        compiler_params=pltpu.CompilerParams(
            dimension_semantics=("parallel",),   # shard batch tiles across TCs (v7x)
        ),
        cost_estimate=pl.CostEstimate(
            flops=32 * B, transcendentals=0, bytes_accessed=16 * B),
    )(p_flat, xi)

    flat_out = out.reshape(-1)
    if padded:
        flat_out = flat_out[:n]
    return flat_out.reshape(B, 2)                       # free reshape when not padded


def init_params(key):
    """Deterministic init mimicking torch.nn.Linear default (uniform ±1/sqrt(fan_in))."""
    params = {}
    bound = 1.0 / jnp.sqrt(2.0)  # fan_in = 2
    for name in ("linear1", "linear2", "linear3"):
        key, kw, kb = jax.random.split(key, 3)
        W = jax.random.uniform(kw, (2, 2), jnp.float32, -bound, bound)  # (out, in)
        b = jax.random.uniform(kb, (2,), jnp.float32, -bound, bound)
        params[name] = (W, b)
    return params


def reference_forward(x, params):
    """Pure-JAX reference for correctness check."""
    w1, b1 = params["linear1"]
    w2, b2 = params["linear2"]
    w3, b3 = params["linear3"]
    h = jnp.maximum(x @ w1.T + b1, 0.0)
    h = jnp.maximum(h @ w2.T + b2, 0.0)
    return h @ w3.T + b3


if __name__ == "__main__":
    key = jax.random.PRNGKey(0)
    key, kx = jax.random.split(key)
    B = 256  # 256*2/128 = 4 lane-interleaved rows -> one dense (4, 128) tile, no pad
    x = jax.random.normal(kx, (B, 2), jnp.float32)
    params = init_params(key)

    out = example_net_forward(x, params)
    out = jax.block_until_ready(out)

    ref = reference_forward(x, params)
    assert out.shape == (B, 2) and out.dtype == jnp.float32
    assert jnp.allclose(out, ref, atol=1e-5, rtol=1e-5)
    print("KERNEL_OK")
</pallas_src>

<mosaic_0001>
module attributes {stable_mosaic.version = 11 : i64} {
  func.func @mlp_kernel(%arg0: i32, %arg1: memref<18xf32, #tpu.memory_space<smem>>, %arg2: memref<4x128xf32, #tpu.memory_space<vmem>>, %arg3: memref<4x128xf32, #tpu.memory_space<vmem>>) attributes {dimension_semantics = [#tpu.dimension_semantics<parallel>], iteration_bounds = array<i64: 1>, scalar_prefetch = 0 : i64, scratch_operands = 0 : i64, tpu.core_type = #tpu.core_type<tc>, window_params = [{transform_indices = @transform_0, window_bounds = array<i64: 18>}, {transform_indices = @transform_1, window_bounds = array<i64: 4, 128>}, {transform_indices = @transform_2, window_bounds = array<i64: 4, 128>}]} {
    %0 = tpu.iota {dimensions = array<i32: 1>} : vector<1x128xi32>
    %c2_i32 = arith.constant 2 : i32
    %c0_i32 = arith.constant 0 : i32
    %1 = arith.cmpi eq, %c2_i32, %c0_i32 : i32
    %c1_i32 = arith.constant 1 : i32
    %2 = arith.select %1, %c1_i32, %c2_i32 : i32
    %3 = vector.broadcast %2 : i32 to vector<1x128xi32>
    %4 = arith.remsi %0, %3 : vector<1x128xi32>
    %c0_i32_0 = arith.constant 0 : i32
    %5 = vector.broadcast %c0_i32_0 : i32 to vector<1x128xi32>
    %6 = arith.cmpi ne, %4, %5 : vector<1x128xi32>
    %c0_i32_1 = arith.constant 0 : i32
    %7 = vector.broadcast %c0_i32_1 : i32 to vector<1x128xi32>
    %8 = arith.cmpi slt, %4, %7 : vector<1x128xi32>
    %c0_i32_2 = arith.constant 0 : i32
    %9 = arith.cmpi slt, %2, %c0_i32_2 : i32
    %10 = vector.broadcast %9 : i1 to vector<1x128xi1>
    %11 = vector.broadcast %10 : vector<1x128xi1> to vector<1x128xi1>
    %12 = arith.xori %8, %11 : vector<1x128xi1>
    %13 = arith.andi %12, %6 : vector<1x128xi1>
    %14 = vector.broadcast %2 : i32 to vector<1x128xi32>
    %15 = arith.addi %4, %14 : vector<1x128xi32>
    %16 = arith.select %13, %15, %4 : vector<1x128xi1>, vector<1x128xi32>
    %c0_i32_3 = arith.constant 0 : i32
    %17 = vector.broadcast %c0_i32_3 : i32 to vector<1x128xi32>
    %18 = arith.cmpi eq, %16, %17 : vector<1x128xi32>
    %c0 = arith.constant 0 : index
    %c0_4 = arith.constant 0 : index
    %19 = vector.load %arg2[%c0, %c0_4] : memref<4x128xf32, #tpu.memory_space<vmem>>, vector<4x128xf32>
    %c0_5 = arith.constant 0 : index
    %20 = memref.load %arg1[%c0_5] : memref<18xf32, #tpu.memory_space<smem>>
    %c1 = arith.constant 1 : index
    %21 = memref.load %arg1[%c1] : memref<18xf32, #tpu.memory_space<smem>>
    %c2 = arith.constant 2 : index
    %22 = memref.load %arg1[%c2] : memref<18xf32, #tpu.memory_space<smem>>
    %c3 = arith.constant 3 : index
    %23 = memref.load %arg1[%c3] : memref<18xf32, #tpu.memory_space<smem>>
    %c4 = arith.constant 4 : index
    %24 = memref.load %arg1[%c4] : memref<18xf32, #tpu.memory_space<smem>>
    %c5 = arith.constant 5 : index
    %25 = memref.load %arg1[%c5] : memref<18xf32, #tpu.memory_space<smem>>
    %c127_i32 = arith.constant 127 : i32
    %26 = tpu.dynamic_rotate %19 by %c127_i32 dim 1 : vector<4x128xf32>, i32 -> vector<4x128xf32>
    %c1_i32_6 = arith.constant 1 : i32
    %27 = tpu.dynamic_rotate %19 by %c1_i32_6 dim 1 : vector<4x128xf32>, i32 -> vector<4x128xf32>
    %28 = vector.shape_cast %18 : vector<1x128xi1> to vector<1x128xi1>
    %29 = vector.broadcast %28 : vector<1x128xi1> to vector<4x128xi1>
    %30 = arith.select %29, %26, %27 : vector<4x128xi1>, vector<4x128xf32>
    %31 = vector.broadcast %20 : f32 to vector<1x128xf32>
    %32 = vector.broadcast %23 : f32 to vector<1x128xf32>
    %33 = arith.select %18, %31, %32 : vector<1x128xi1>, vector<1x128xf32>
    %34 = vector.broadcast %21 : f32 to vector<1x128xf32>
    %35 = vector.broadcast %22 : f32 to vector<1x128xf32>
    %36 = arith.select %18, %34, %35 : vector<1x128xi1>, vector<1x128xf32>
    %37 = vector.broadcast %24 : f32 to vector<1x128xf32>
    %38 = vector.broadcast %25 : f32 to vector<1x128xf32>
    %39 = arith.select %18, %37, %38 : vector<1x128xi1>, vector<1x128xf32>
    %40 = vector.broadcast %33 : vector<1x128xf32> to vector<4x128xf32>
    %41 = arith.mulf %40, %19 : vector<4x128xf32>
    %42 = vector.broadcast %36 : vector<1x128xf32> to vector<4x128xf32>
    %43 = arith.mulf %42, %30 : vector<4x128xf32>
    %44 = arith.addf %41, %43 : vector<4x128xf32>
    %45 = vector.broadcast %39 : vector<1x128xf32> to vector<4x128xf32>
    %46 = arith.addf %44, %45 : vector<4x128xf32>
    %cst = arith.constant 0.000000e+00 : f32
    %47 = vector.broadcast %cst : f32 to vector<4x128xf32>
    %48 = arith.maximumf %46, %47 : vector<4x128xf32>
    %c6 = arith.constant 6 : index
    %49 = memref.load %arg1[%c6] : memref<18xf32, #tpu.memory_space<smem>>
    %c7 = arith.constant 7 : index
    %50 = memref.load %arg1[%c7] : memref<18xf32, #tpu.memory_space<smem>>
    %c8 = arith.constant 8 : index
    %51 = memref.load %arg1[%c8] : memref<18xf32, #tpu.memory_space<smem>>
    %c9 = arith.constant 9 : index
    %52 = memref.load %arg1[%c9] : memref<18xf32, #tpu.memory_space<smem>>
    %c10 = arith.constant 10 : index
    %53 = memref.load %arg1[%c10] : memref<18xf32, #tpu.memory_space<smem>>
    %c11 = arith.constant 11 : index
    %54 = memref.load %arg1[%c11] : memref<18xf32, #tpu.memory_space<smem>>
    %c127_i32_7 = arith.constant 127 : i32
    %55 = tpu.dynamic_rotate %48 by %c127_i32_7 dim 1 : vector<4x128xf32>, i32 -> vector<4x128xf32>
    %c1_i32_8 = arith.constant 1 : i32
    %56 = tpu.dynamic_rotate %48 by %c1_i32_8 dim 1 : vector<4x128xf32>, i32 -> vector<4x128xf32>
    %57 = vector.shape_cast %18 : vector<1x128xi1> to vector<1x128xi1>
    %58 = vector.broadcast %57 : vector<1x128xi1> to vector<4x128xi1>
    %59 = arith.select %58, %55, %56 : vector<4x128xi1>, vector<4x128xf32>
    %60 = vector.broadcast %49 : f32 to vector<1x128xf32>
    %61 = vector.broadcast %52 : f32 to vector<1x128xf32>
    %62 = arith.select %18, %60, %61 : vector<1x128xi1>, vector<1x128xf32>
    %63 = vector.broadcast %50 : f32 to vector<1x128xf32>
    %64 = vector.broadcast %51 : f32 to vector<1x128xf32>
    %65 = arith.select %18, %63, %64 : vector<1x128xi1>, vector<1x128xf32>
    %66 = vector.broadcast %53 : f32 to vector<1x128xf32>
    %67 = vector.broadcast %54 : f32 to vector<1x128xf32>
    %68 = arith.select %18, %66, %67 : vector<1x128xi1>, vector<1x128xf32>
    %69 = vector.broadcast %62 : vector<1x128xf32> to vector<4x128xf32>
    %70 = arith.mulf %69, %48 : vector<4x128xf32>
    %71 = vector.broadcast %65 : vector<1x128xf32> to vector<4x128xf32>
    %72 = arith.mulf %71, %59 : vector<4x128xf32>
    %73 = arith.addf %70, %72 : vector<4x128xf32>
    %74 = vector.broadcast %68 : vector<1x128xf32> to vector<4x128xf32>
    %75 = arith.addf %73, %74 : vector<4x128xf32>
    %cst_9 = arith.constant 0.000000e+00 : f32
    %76 = vector.broadcast %cst_9 : f32 to vector<4x128xf32>
    %77 = arith.maximumf %75, %76 : vector<4x128xf32>
    %c12 = arith.constant 12 : index
    %78 = memref.load %arg1[%c12] : memref<18xf32, #tpu.memory_space<smem>>
    %c13 = arith.constant 13 : index
    %79 = memref.load %arg1[%c13] : memref<18xf32, #tpu.memory_space<smem>>
    %c14 = arith.constant 14 : index
    %80 = memref.load %arg1[%c14] : memref<18xf32, #tpu.memory_space<smem>>
    %c15 = arith.constant 15 : index
    %81 = memref.load %arg1[%c15] : memref<18xf32, #tpu.memory_space<smem>>
    %c16 = arith.constant 16 : index
    %82 = memref.load %arg1[%c16] : memref<18xf32, #tpu.memory_space<smem>>
    %c17 = arith.constant 17 : index
    %83 = memref.load %arg1[%c17] : memref<18xf32, #tpu.memory_space<smem>>
    %c127_i32_10 = arith.constant 127 : i32
    %84 = tpu.dynamic_rotate %77 by %c127_i32_10 dim 1 : vector<4x128xf32>, i32 -> vector<4x128xf32>
    %c1_i32_11 = arith.constant 1 : i32
    %85 = tpu.dynamic_rotate %77 by %c1_i32_11 dim 1 : vector<4x128xf32>, i32 -> vector<4x128xf32>
    %86 = vector.shape_cast %18 : vector<1x128xi1> to vector<1x128xi1>
    %87 = vector.broadcast %86 : vector<1x128xi1> to vector<4x128xi1>
    %88 = arith.select %87, %84, %85 : vector<4x128xi1>, vector<4x128xf32>
    %89 = vector.broadcast %78 : f32 to vector<1x128xf32>
    %90 = vector.broadcast %81 : f32 to vector<1x128xf32>
    %91 = arith.select %18, %89, %90 : vector<1x128xi1>, vector<1x128xf32>
    %92 = vector.broadcast %79 : f32 to vector<1x128xf32>
    %93 = vector.broadcast %80 : f32 to vector<1x128xf32>
    %94 = arith.select %18, %92, %93 : vector<1x128xi1>, vector<1x128xf32>
    %95 = vector.broadcast %82 : f32 to vector<1x128xf32>
    %96 = vector.broadcast %83 : f32 to vector<1x128xf32>
    %97 = arith.select %18, %95, %96 : vector<1x128xi1>, vector<1x128xf32>
    %98 = vector.broadcast %91 : vector<1x128xf32> to vector<4x128xf32>
    %99 = arith.mulf %98, %77 : vector<4x128xf32>
    %100 = vector.broadcast %94 : vector<1x128xf32> to vector<4x128xf32>
    %101 = arith.mulf %100, %88 : vector<4x128xf32>
    %102 = arith.addf %99, %101 : vector<4x128xf32>
    %103 = vector.broadcast %97 : vector<1x128xf32> to vector<4x128xf32>
    %104 = arith.addf %102, %103 : vector<4x128xf32>
    %c0_12 = arith.constant 0 : index
    %c0_13 = arith.constant 0 : index
    %105 = vector.load %arg3[%c0_12, %c0_13] : memref<4x128xf32, #tpu.memory_space<vmem>>, vector<4x128xf32>
    tpu.vector_store %arg3[%c0_12, %c0_13], %104 {strides = array<i32>} : memref<4x128xf32, #tpu.memory_space<vmem>>, vector<4x128xf32>,
    return
  }
  func.func @transform_0(%arg0: i32) -> i32 {
    %c0_i32 = arith.constant 0 : i32
    %c0_i32_0 = arith.constant 0 : i32
    return %c0_i32 : i32
  }
  func.func @transform_1(%arg0: i32) -> (i32, i32) {
    %c0_i32 = arith.constant 0 : i32
    %c0_i32_0 = arith.constant 0 : i32
    return %arg0, %c0_i32 : i32, i32
  }
  func.func @transform_2(%arg0: i32) -> (i32, i32) {
    %c0_i32 = arith.constant 0 : i32
    %c0_i32_0 = arith.constant 0 : i32
    return %arg0, %c0_i32 : i32, i32
  }
}

</mosaic_0001>

<bundles_post_ra>
// kernel: example_net_forward.1
= control target key start
LH: loop header
LB: loop body
LE: loop exit
PB: predicated region body
PF: predicated region fallthrough
CT: control target
= control target key end

     0   :  { %7 = vsyncpa [#allocation3], 0  ;;  %s217_s0 = inlined_call_operand.vmem [shape: f32[18], index: 0, kind: input, shape index: {}]   ;;  %s218_s1 = inlined_call_operand.vmem [shape: f32[4,128], index: 1, kind: input, shape index: {}]   ;;  %s219_s2 = inlined_call_operand.vmem [shape: f32[4,128], index: 2, kind: output, shape index: {}]  }
   0x1   :  { %s14_s11 = sshll.u32 %s217_s0, 4  ;;  %s15_s11 = int_to_ptr.vmem [resolvable:$true] %s14_s11 }
   0x2   :  { %s142_s12 = scalar_lea.vmem %s15_s11, 16  ;;  %p147_p1 = scmp.lt.s32.totalorder %s15_s11, %s15_s11 }
   0x3   :  { %p143_p0 = scmp.ne.s32.totalorder %s15_s11, %s142_s12  ;;  %p148_p2 = scmp.lt.s32.totalorder %s142_s12, %s142_s12 }
   0x5   :  { %p149_p3 = por %p148_p2, %p147_p1 }
   0x7   :  { %p150_p4 = pnand %p149_p3, %p143_p0 }
   0x9   :  { %153 = shalt.err (!%p150_p4)
}
   0xa   :  { %s156_s13 = smov [#allocation2]  }
   0xb   :  { %17 = dma.vmem_to_smem %s15_s11, 16, %s156_s13, [#allocation3]  }
   0xc   :  { %154 = dma.done.wait [#allocation3], 16  }
   0xd   :  { %155 = vsyncadd [#allocation3], 4294967280 }
   0xe   :  { %23 = sfence }
   0xf   :  { %v39_v0 = vld [vmem:[%s218_s1] sm:$0xf]  ;;  %s157_s16 = smov 127   ;;  %s158_s0 = smov 1   ;;  %v24_v1 = vlaneseq }
  0x10   :  { %46 = vrot.lane.b32.xlu0 %v39_v0, %s157_s16  ;;  %s40_s17 = sld [smem:[#allocation2]]  ;;  %s124_s18 = sld [smem:[#allocation2 + $0x3]] }
  0x11   :  { %v25_v2 = vand.u32 127, %v24_v1  ;;  %s122_s19 = sld [smem:[#allocation2 + $0x1]]  ;;  %s123_s20 = sld [smem:[#allocation2 + $0x2]] }
  0x12   :  { %s125_s21 = sld [smem:[#allocation2 + $0x4]]  ;;  %s126_s22 = sld [smem:[#allocation2 + $0x5]] }
  0x13   :  { %v30_v3 = vand.u32 1, %v25_v2  ;;  %s127_s1 = sld [smem:[#allocation2 + $0x6]]  ;;  %s130_s23 = sld [smem:[#allocation2 + $0x9]] }
  0x14   :  { %48 = vrot.lane.b32.xlu0 %v39_v0, %s158_s0  ;;  %s128_s24 = sld [smem:[#allocation2 + $0x7]]  ;;  %s129_s25 = sld [smem:[#allocation2 + $0x8]] }
  0x15   :  { %vm182_vm0 = vcmp.eq.s32.totalorder %v30_v3, 0  ;;  %s131_s26 = sld [smem:[#allocation2 + $0xa]]  ;;  %s132_s27 = sld [smem:[#allocation2 + $0xb]] }
  0x16   :  { %v53_v4 = vstv %s40_s17  ;;  %v54_v5 = vstv %s124_s18  ;;  %s133_s28 = sld [smem:[#allocation2 + $0xc]]  ;;  %s136_s29 = sld [smem:[#allocation2 + $0xf]] }
  0x17   :  { %v56_v8 = vstv %s122_s19  ;;  %v57_v9 = vstv %s123_s20  ;;  %v55_v10 = vsel %vm182_vm0, %v53_v4, %v54_v5  ;;  %s134_s30 = sld [smem:[#allocation2 + $0xd]]  ;;  %s135_s3 = sld [smem:[#allocation2 + $0xe]] }
  0x18   :  { %v58_v11 = vsel %vm182_vm0, %v56_v8, %v57_v9  ;;  %v62_v12 = vmul.f32 %v55_v10, %v39_v0  ;;  %v59_v14 = vstv %s125_s21  ;;  %v60_v15 = vstv %s126_s22  ;;  %s137_s4 = sld [smem:[#allocation2 + $0x10]]  ;;  %s138_s5 = sld [smem:[#allocation2 + $0x11]] }
  0x19   :  { %v61_v18 = vsel %vm182_vm0, %v59_v14, %v60_v15  ;;  %v78_v23 = vstv %s127_s1  ;;  %v79_v24 = vstv %s130_s23 }
  0x1a   :  { %v81_v25 = vstv %s128_s24  ;;  %v82_v26 = vstv %s129_s25  ;;  %v80_v27 = vsel %vm182_vm0, %v78_v23, %v79_v24 }
  0x1b   :  { %v83_v28 = vsel %vm182_vm0, %v81_v25, %v82_v26  ;;  %v84_v30 = vstv %s131_s26  ;;  %v85_v31 = vstv %s132_s27 }
  0x1c   :  { %v86_v35 = vsel %vm182_vm0, %v84_v30, %v85_v31  ;;  %v103_v39 = vstv %s133_s28  ;;  %v104_v40 = vstv %s136_s29 }
  0x1d   :  { %v106_v41 = vstv %s134_s30  ;;  %v107_v42 = vstv %s135_s3  ;;  %v105_v43 = vsel %vm182_vm0, %v103_v39, %v104_v40 }
  0x1e   :  { %v108_v44 = vsel %vm182_vm0, %v106_v41, %v107_v42  ;;  %v109_v46 = vstv %s137_s4  ;;  %v110_v47 = vstv %s138_s5 }
  0x1f   :  { %v111_v52 = vsel %vm182_vm0, %v109_v46, %v110_v47 }
  0x82   :  { %v47_v7 = vpop.permute.xlu0 %46 }
  0x86   :  { %v49_v13 = vpop.permute.xlu0 %48 }
  0x87   :  { %v52_v16 = vsel %vm182_vm0, %v47_v7, %v49_v13 }
  0x88   :  { %v63_v17 = vmul.f32 %v58_v11, %v52_v16 }
  0x8a   :  { %v64_v19 = vadd.f32 %v63_v17, %v62_v12 }
  0x8c   :  { %v65_v20 = vadd.f32 %v64_v19, %v61_v18 }
  0x8e   :  { %v66_v21 = vmax.f32 %v65_v20, 0.0 }
  0x90   :  { %73 = vrot.lane.b32.xlu1 %v66_v21, %s157_s16  ;;  %v87_v33 = vmul.f32 %v80_v27, %v66_v21 }
  0x94   :  { %75 = vrot.lane.b32.xlu1 %v66_v21, %s158_s0 }
 0x102   :  { %v74_v22 = vpop.permute.xlu1 %73 }
 0x106   :  { %v76_v29 = vpop.permute.xlu1 %75 }
 0x107   :  { %v77_v32 = vsel %vm182_vm0, %v74_v22, %v76_v29 }
 0x108   :  { %v88_v34 = vmul.f32 %v83_v28, %v77_v32 }
 0x10a   :  { %v89_v36 = vadd.f32 %v88_v34, %v87_v33 }
 0x10c   :  { %v90_v37 = vadd.f32 %v89_v36, %v86_v35 }
 0x10e   :  { %v91_v38 = vmax.f32 %v90_v37, 0.0 }
 0x110   :  { %100 = vrot.lane.b32.xlu1 %v91_v38, %s158_s0  ;;  %98 = vrot.lane.b32.xlu0 %v91_v38, %s157_s16  ;;  %v112_v50 = vmul.f32 %v105_v43, %v91_v38 }
 0x182   :  { %v101_v45 = vpop.permute.xlu1 %100  ;;  %v99_v48 = vpop.permute.xlu0 %98 }
 0x183   :  { %v102_v49 = vsel %vm182_vm0, %v99_v48, %v101_v45 }
 0x184   :  { %v113_v51 = vmul.f32 %v108_v44, %v102_v49 }
 0x186   :  { %v114_v53 = vadd.f32 %v113_v51, %v112_v50 }
 0x188   :  { %v115_v54 = vadd.f32 %v114_v53, %v111_v52 }
 0x18a   :  { %116 = vst [vmem:[%s219_s2] sm:$0xf] %v115_v54 }
 0x18b   :  { %121 = vsyncpa [#allocation3], 1 }

</bundles_post_ra>
